<compile_context>
chip_gen: v5e
topology: v5e:2x2
jax: 0.10.0
libtpu: 0.0.40
codegen_flags: <defaults>
</compile_context>

<pallas_src>
import functools

import jax
import jax.numpy as jnp
from jax.experimental import pallas as pl
from jax.experimental.pallas import tpu as pltpu


def _cutmix_kernel(shuf_ref, box_ref, col_ref, x_ref, xsrc_hbm, o_ref,
                   gather_buf, sem, *, group, width, bands):
    """One grid step: `group` batch elements in lane-dense (group, C, H*W) layout.

    shuf_ref  : (B,) int32 SMEM   scalar-prefetched shuffle permutation
    box_ref   : (4,) int32 SMEM   scalar-prefetched [x1, y1, x2, y2]
    col_ref   : (1, H*W) int32    column index of every flattened pixel
    x_ref     : (group, C, H*W)   original batch elements (auto-pipelined)
    xsrc_hbm  : (B, C, H*W) HBM   gather source (memory_space=pl.ANY)
    o_ref     : (group, C, H*W)   output block
    gather_buf: VMEM (group, C, H*W) scratch for gathered shuffled elements
    sem       : DMA semaphores (group, len(bands))
    """
    i = pl.program_id(0)
    x1 = box_ref[0]
    y1 = box_ref[1]
    x2 = box_ref[2]
    y2 = box_ref[3]

    # --- 1) issue gather DMAs for the `group` shuffled source elements ------
    # With len(bands) > 1 only the row bands that intersect the cut box are
    # fetched; the rest of gather_buf stays stale but is masked off below.
    pending = []
    for g in range(group):
        src = shuf_ref[i * group + g]
        for b, (r0, r1) in enumerate(bands):
            lo = r0 * width
            sz = (r1 - r0) * width
            cp = pltpu.make_async_copy(
                xsrc_hbm.at[src, :, pl.ds(lo, sz)],
                gather_buf.at[g, :, pl.ds(lo, sz)],
                sem.at[g, b],
            )
            if len(bands) == 1:
                cp.start()
                pending.append((None, cp))
            else:
                need = jnp.logical_and(r0 < y2, r1 > y1)

                @pl.when(need)
                def _start(cp=cp):
                    cp.start()

                pending.append((need, cp))

    # --- 2) build the lane-dense cut-box mask while the DMAs are in flight --
    hw = x_ref.shape[-1]
    idx = jax.lax.broadcasted_iota(jnp.int32, (1, hw), 1)   # flat pixel index
    xx = col_ref[...]                                        # column index
    # row in [y1, y2)  <=>  flat index in [y1*W, y2*W)   (no vector div/mod)
    inside = (idx >= y1 * width) & (idx < y2 * width) & (xx >= x1) & (xx < x2)

    # --- 3) wait for the gather, then select + lane-dense store -------------
    for need, cp in pending:
        if need is None:
            cp.wait()
        else:
            @pl.when(need)
            def _wait(cp=cp):
                cp.wait()

    o_ref[...] = jnp.where(inside, gather_buf[...], x_ref[...])


def cutmix_block(x, shuffle_idx, mix_box, *, max_group=None):
    """Apply CutMix to one block.

    x:           (B, C, H, W) float array
    shuffle_idx: (B,) int32 permutation of [0, B)
    mix_box:     (4,) int32 array [x1, y1, x2, y2]
    returns (B, C, H, W) with out[b, :, y1:y2, x1:x2] = x[shuffle[b], :, y1:y2, x1:x2]
    """
    B, C, H, W = x.shape
    HW = H * W
    per_sample = C * HW * x.dtype.itemsize

    # Group size: amortize per-grid-step overhead over several batch elements
    # while keeping resident VMEM (2x double-buffered input + 2x double-buffered
    # output + 1x gather scratch) ~= 5 * G * per_sample under a ~20 MiB budget
    # (safe on v7x's 64 MiB physical VMEM).
    budget = 20 * 1024 * 1024
    cap = max(1, min(B, budget // (5 * per_sample), 32))
    if max_group is not None:
        cap = max(1, min(cap, max_group))
    group = 1
    for d in range(1, int(cap) + 1):
        if B % d == 0:
            group = d

    # Row bands for the shuffled-source gather: band DMAs only when the slabs
    # are 128-lane aligned in the flattened layout and the image is big enough
    # for the traffic cut to beat the extra DMA-issue cost.
    use_bands = (per_sample >= (64 << 10)) and (H % 8 == 0) and ((8 * W) % 128 == 0)
    if use_bands:
        n_slabs = H // 8
        n_bands = min(n_slabs, 8)
        bands = []
        s = 0
        for b in range(n_bands):
            cnt = n_slabs // n_bands + (1 if b < n_slabs % n_bands else 0)
            bands.append((8 * s, 8 * (s + cnt)))
            s += cnt
    else:
        bands = [(0, H)]

    xf = x.reshape(B, C, HW)                                    # lane-dense
    col_ids = jnp.tile(jnp.arange(W, dtype=jnp.int32), H).reshape(1, HW)

    kernel = functools.partial(_cutmix_kernel, group=group, width=W, bands=bands)

    grid_spec = pltpu.PrefetchScalarGridSpec(
        num_scalar_prefetch=2,                                  # shuffle, box
        grid=(B // group,),
        in_specs=[
            pl.BlockSpec((1, HW), lambda i, shuf, box: (0, 0)),          # col ids
            pl.BlockSpec((group, C, HW), lambda i, shuf, box: (i, 0, 0)),  # x block
            pl.BlockSpec(memory_space=pl.ANY),                   # gather src (HBM)
        ],
        out_specs=pl.BlockSpec((group, C, HW), lambda i, shuf, box: (i, 0, 0)),
        scratch_shapes=[
            pltpu.VMEM((group, C, HW), x.dtype),
            pltpu.SemaphoreType.DMA((group, len(bands))),
        ],
    )

    out_flat = pl.pallas_call(
        kernel,
        out_shape=jax.ShapeDtypeStruct((B, C, HW), x.dtype),
        grid_spec=grid_spec,
        compiler_params=pltpu.CompilerParams(
            dimension_semantics=("parallel",),    # v7x: shard batch over 2 TCs
            vmem_limit_bytes=48 * 1024 * 1024,    # raise v5e's 16 MiB default
        ),
    )(shuffle_idx, mix_box, col_ids, xf, xf)
    return out_flat.reshape(B, C, H, W)


class CustomCutMix:
    """JAX/Pallas port of the PyTorch CustomCutMix module."""

    def __init__(self, alpha=0.5):
        self.alpha = float(alpha)

    def create_box(self, key, W, H):
        k_lam, k_cx, k_cy = jax.random.split(key, 3)
        lam = jax.random.beta(k_lam, self.alpha, self.alpha, shape=(1,))
        cut_rat = jnp.sqrt(1.0 - lam)
        cut_w = jnp.round(W * cut_rat).astype(jnp.int32)
        cut_h = jnp.round(H * cut_rat).astype(jnp.int32)
        cx = jax.random.randint(k_cx, (1,), 0, W, dtype=jnp.int32)
        cy = jax.random.randint(k_cy, (1,), 0, H, dtype=jnp.int32)
        x1 = jnp.clip(cx - cut_w // 2, 0, W)
        y1 = jnp.clip(cy - cut_h // 2, 0, H)
        x2 = jnp.clip(cx + cut_w // 2, 0, W)
        y2 = jnp.clip(cy + cut_h // 2, 0, H)
        return (x1, y1, x2, y2)

    def __call__(self, *blocks, mix_box, shuffle_key, max_group=None):
        bs = blocks[0].shape[0]
        shuffle = jax.random.permutation(shuffle_key, bs).astype(jnp.int32)
        x1, y1, x2, y2 = mix_box
        box = jnp.concatenate(
            [x1.astype(jnp.int32), y1.astype(jnp.int32),
             x2.astype(jnp.int32), y2.astype(jnp.int32)]
        )
        # Same shuffle + same box applied to every block (PyTorch semantics).
        return tuple(cutmix_block(b, shuffle, box, max_group=max_group)
                     for b in blocks)


def _reference(x, shuffle, mix_box):
    x1, y1, x2, y2 = [int(v[0]) for v in mix_box]
    return x.at[:, :, y1:y2, x1:x2].set(x[shuffle][:, :, y1:y2, x1:x2])


if __name__ == "__main__":
    root = jax.random.PRNGKey(0)
    model = CustomCutMix(alpha=0.5)

    # Test 1: small image -> full-element gather path, batch grouping G=2.
    k_x, k_box, k_shuf = jax.random.split(jax.random.fold_in(root, 1), 3)
    B, C, H, W = 2, 4, 16, 16
    x = jax.random.normal(k_x, (B, C, H, W), dtype=jnp.float32)
    mix_box = model.create_box(k_box, W, H)
    (out,) = model(x, mix_box=mix_box, shuffle_key=k_shuf)
    out = jax.block_until_ready(out)
    shuffle = jax.random.permutation(k_shuf, B).astype(jnp.int32)
    assert jnp.allclose(out, _reference(x, shuffle, mix_box)), "test 1 mismatch"

    # Test 2: larger feature map -> row-band gather path + multi-step grid.
    k_x, k_box, k_shuf = jax.random.split(jax.random.fold_in(root, 2), 3)
    B, C, H, W = 4, 8, 64, 128
    x = jax.random.normal(k_x, (B, C, H, W), dtype=jnp.float32)
    mix_box = model.create_box(k_box, W, H)
    (out,) = model(x, mix_box=mix_box, shuffle_key=k_shuf, max_group=2)
    out = jax.block_until_ready(out)
    shuffle = jax.random.permutation(k_shuf, B).astype(jnp.int32)
    assert jnp.allclose(out, _reference(x, shuffle, mix_box)), "test 2 mismatch"

    print("KERNEL_OK")
</pallas_src>

<mosaic_0001>
module attributes {stable_mosaic.version = 11 : i64} {
  func.func @_cutmix_kernel(%arg0: i32, %arg1: memref<2xi32, #tpu.memory_space<smem>>, %arg2: memref<4xi32, #tpu.memory_space<smem>>, %arg3: memref<1x256xi32, #tpu.memory_space<vmem>>, %arg4: memref<2x4x256xf32, #tpu.memory_space<vmem>>, %arg5: memref<2x4x256xf32, #tpu.memory_space<any>>, %arg6: memref<2x4x256xf32, #tpu.memory_space<vmem>>, %arg7: memref<2x4x256xf32, #tpu.memory_space<vmem>>, %arg8: memref<2x1x!tpu.dma_semaphore, #tpu.memory_space<semaphore_mem>>) attributes {dimension_semantics = [#tpu.dimension_semantics<parallel>], iteration_bounds = array<i64: 1>, scalar_prefetch = 2 : i64, scratch_operands = 2 : i64, tpu.core_type = #tpu.core_type<tc>, window_params = [{pipeline_mode = #tpu.pipeline_mode<synchronous>, transform_indices = @transform_0, window_bounds = array<i64: 1, 256>}, {transform_indices = @transform_1, window_bounds = array<i64: 2, 4, 256>}, {}, {transform_indices = @transform_3, window_bounds = array<i64: 2, 4, 256>}]} {
    %c0 = arith.constant 0 : index
    %0 = memref.load %arg2[%c0] : memref<4xi32, #tpu.memory_space<smem>>
    %c1 = arith.constant 1 : index
    %1 = memref.load %arg2[%c1] : memref<4xi32, #tpu.memory_space<smem>>
    %c2 = arith.constant 2 : index
    %2 = memref.load %arg2[%c2] : memref<4xi32, #tpu.memory_space<smem>>
    %c3 = arith.constant 3 : index
    %3 = memref.load %arg2[%c3] : memref<4xi32, #tpu.memory_space<smem>>
    %c2_i32 = arith.constant 2 : i32
    %4 = arith.muli %arg0, %c2_i32 : i32
    %c0_i32 = arith.constant 0 : i32
    %5 = arith.addi %4, %c0_i32 : i32
    %6 = arith.index_cast %5 : i32 to index
    %7 = memref.load %arg1[%6] : memref<2xi32, #tpu.memory_space<smem>>
    %c0_i32_0 = arith.constant 0 : i32
    %c0_i32_1 = arith.constant 0 : i32
    %c0_i32_2 = arith.constant 0 : i32
    %c0_i32_3 = arith.constant 0 : i32
    %c0_i32_4 = arith.constant 0 : i32
    %8 = tpu.memref_slice %arg5[%7, %c0_i32_3, %c0_i32_4] : memref<2x4x256xf32, #tpu.memory_space<any>> -> memref<1x4x256xf32, #tpu.memory_space<any>>
    %9 = tpu.memref_squeeze %8 : memref<1x4x256xf32, #tpu.memory_space<any>> -> memref<4x256xf32, #tpu.memory_space<any>>
    %c0_i32_5 = arith.constant 0 : i32
    %c0_i32_6 = arith.constant 0 : i32
    %10 = tpu.memref_slice %arg7[%c0_i32_0, %c0_i32_5, %c0_i32_6] : memref<2x4x256xf32, #tpu.memory_space<vmem>> -> memref<1x4x256xf32, #tpu.memory_space<vmem>>
    %11 = tpu.memref_squeeze %10 : memref<1x4x256xf32, #tpu.memory_space<vmem>> -> memref<4x256xf32, #tpu.memory_space<vmem>>
    %12 = tpu.memref_slice %arg8[%c0_i32_1, %c0_i32_2] : memref<2x1x!tpu.dma_semaphore, #tpu.memory_space<semaphore_mem>> -> memref<1x1x!tpu.dma_semaphore, #tpu.memory_space<semaphore_mem>>
    %13 = tpu.memref_squeeze %12 : memref<1x1x!tpu.dma_semaphore, #tpu.memory_space<semaphore_mem>> -> memref<!tpu.dma_semaphore, #tpu.memory_space<semaphore_mem>>
    tpu.enqueue_dma source(%9 : memref<4x256xf32, #tpu.memory_space<any>>) target(%11 : memref<4x256xf32, #tpu.memory_space<vmem>>) target_semaphore(%13 : memref<!tpu.dma_semaphore, #tpu.memory_space<semaphore_mem>>)
    %c2_i32_7 = arith.constant 2 : i32
    %14 = arith.muli %arg0, %c2_i32_7 : i32
    %c1_i32 = arith.constant 1 : i32
    %15 = arith.addi %14, %c1_i32 : i32
    %16 = arith.index_cast %15 : i32 to index
    %17 = memref.load %arg1[%16] : memref<2xi32, #tpu.memory_space<smem>>
    %c1_i32_8 = arith.constant 1 : i32
    %c1_i32_9 = arith.constant 1 : i32
    %c0_i32_10 = arith.constant 0 : i32
    %c0_i32_11 = arith.constant 0 : i32
    %c0_i32_12 = arith.constant 0 : i32
    %18 = tpu.memref_slice %arg5[%17, %c0_i32_11, %c0_i32_12] : memref<2x4x256xf32, #tpu.memory_space<any>> -> memref<1x4x256xf32, #tpu.memory_space<any>>
    %19 = tpu.memref_squeeze %18 : memref<1x4x256xf32, #tpu.memory_space<any>> -> memref<4x256xf32, #tpu.memory_space<any>>
    %c0_i32_13 = arith.constant 0 : i32
    %c0_i32_14 = arith.constant 0 : i32
    %20 = tpu.memref_slice %arg7[%c1_i32_8, %c0_i32_13, %c0_i32_14] : memref<2x4x256xf32, #tpu.memory_space<vmem>> -> memref<1x4x256xf32, #tpu.memory_space<vmem>>
    %21 = tpu.memref_squeeze %20 : memref<1x4x256xf32, #tpu.memory_space<vmem>> -> memref<4x256xf32, #tpu.memory_space<vmem>>
    %22 = tpu.memref_slice %arg8[%c1_i32_9, %c0_i32_10] : memref<2x1x!tpu.dma_semaphore, #tpu.memory_space<semaphore_mem>> -> memref<1x1x!tpu.dma_semaphore, #tpu.memory_space<semaphore_mem>>
    %23 = tpu.memref_squeeze %22 : memref<1x1x!tpu.dma_semaphore, #tpu.memory_space<semaphore_mem>> -> memref<!tpu.dma_semaphore, #tpu.memory_space<semaphore_mem>>
    tpu.enqueue_dma source(%19 : memref<4x256xf32, #tpu.memory_space<any>>) target(%21 : memref<4x256xf32, #tpu.memory_space<vmem>>) target_semaphore(%23 : memref<!tpu.dma_semaphore, #tpu.memory_space<semaphore_mem>>)
    %24 = tpu.iota {dimensions = array<i32: 1>} : vector<1x256xi32>
    %c0_15 = arith.constant 0 : index
    %c0_16 = arith.constant 0 : index
    %25 = vector.load %arg3[%c0_15, %c0_16] : memref<1x256xi32, #tpu.memory_space<vmem>>, vector<1x256xi32>
    %c16_i32 = arith.constant 16 : i32
    %26 = arith.muli %1, %c16_i32 : i32
    %27 = vector.broadcast %26 : i32 to vector<1x256xi32>
    %28 = arith.cmpi sge, %24, %27 : vector<1x256xi32>
    %c16_i32_17 = arith.constant 16 : i32
    %29 = arith.muli %3, %c16_i32_17 : i32
    %30 = vector.broadcast %29 : i32 to vector<1x256xi32>
    %31 = arith.cmpi slt, %24, %30 : vector<1x256xi32>
    %32 = arith.andi %28, %31 : vector<1x256xi1>
    %33 = vector.broadcast %0 : i32 to vector<1x256xi32>
    %34 = arith.cmpi sge, %25, %33 : vector<1x256xi32>
    %35 = arith.andi %32, %34 : vector<1x256xi1>
    %36 = vector.broadcast %2 : i32 to vector<1x256xi32>
    %37 = arith.cmpi slt, %25, %36 : vector<1x256xi32>
    %38 = arith.andi %35, %37 : vector<1x256xi1>
    %c0_i32_18 = arith.constant 0 : i32
    %c0_i32_19 = arith.constant 0 : i32
    %c0_i32_20 = arith.constant 0 : i32
    %c0_i32_21 = arith.constant 0 : i32
    %c0_i32_22 = arith.constant 0 : i32
    %39 = tpu.memref_slice %arg5[%7, %c0_i32_21, %c0_i32_22] : memref<2x4x256xf32, #tpu.memory_space<any>> -> memref<1x4x256xf32, #tpu.memory_space<any>>
    %40 = tpu.memref_squeeze %39 : memref<1x4x256xf32, #tpu.memory_space<any>> -> memref<4x256xf32, #tpu.memory_space<any>>
    %c0_i32_23 = arith.constant 0 : i32
    %c0_i32_24 = arith.constant 0 : i32
    %41 = tpu.memref_slice %arg7[%c0_i32_18, %c0_i32_23, %c0_i32_24] : memref<2x4x256xf32, #tpu.memory_space<vmem>> -> memref<1x4x256xf32, #tpu.memory_space<vmem>>
    %42 = tpu.memref_squeeze %41 : memref<1x4x256xf32, #tpu.memory_space<vmem>> -> memref<4x256xf32, #tpu.memory_space<vmem>>
    %43 = tpu.memref_slice %arg8[%c0_i32_19, %c0_i32_20] : memref<2x1x!tpu.dma_semaphore, #tpu.memory_space<semaphore_mem>> -> memref<1x1x!tpu.dma_semaphore, #tpu.memory_space<semaphore_mem>>
    %44 = tpu.memref_squeeze %43 : memref<1x1x!tpu.dma_semaphore, #tpu.memory_space<semaphore_mem>> -> memref<!tpu.dma_semaphore, #tpu.memory_space<semaphore_mem>>
    tpu.wait_dma2 semaphore(%44 : memref<!tpu.dma_semaphore, #tpu.memory_space<semaphore_mem>>) src(%40 : memref<4x256xf32, #tpu.memory_space<any>>) dst(%42 : memref<4x256xf32, #tpu.memory_space<vmem>>)
    %c1_i32_25 = arith.constant 1 : i32
    %c1_i32_26 = arith.constant 1 : i32
    %c0_i32_27 = arith.constant 0 : i32
    %c0_i32_28 = arith.constant 0 : i32
    %c0_i32_29 = arith.constant 0 : i32
    %45 = tpu.memref_slice %arg5[%17, %c0_i32_28, %c0_i32_29] : memref<2x4x256xf32, #tpu.memory_space<any>> -> memref<1x4x256xf32, #tpu.memory_space<any>>
    %46 = tpu.memref_squeeze %45 : memref<1x4x256xf32, #tpu.memory_space<any>> -> memref<4x256xf32, #tpu.memory_space<any>>
    %c0_i32_30 = arith.constant 0 : i32
    %c0_i32_31 = arith.constant 0 : i32
    %47 = tpu.memref_slice %arg7[%c1_i32_25, %c0_i32_30, %c0_i32_31] : memref<2x4x256xf32, #tpu.memory_space<vmem>> -> memref<1x4x256xf32, #tpu.memory_space<vmem>>
    %48 = tpu.memref_squeeze %47 : memref<1x4x256xf32, #tpu.memory_space<vmem>> -> memref<4x256xf32, #tpu.memory_space<vmem>>
    %49 = tpu.memref_slice %arg8[%c1_i32_26, %c0_i32_27] : memref<2x1x!tpu.dma_semaphore, #tpu.memory_space<semaphore_mem>> -> memref<1x1x!tpu.dma_semaphore, #tpu.memory_space<semaphore_mem>>
    %50 = tpu.memref_squeeze %49 : memref<1x1x!tpu.dma_semaphore, #tpu.memory_space<semaphore_mem>> -> memref<!tpu.dma_semaphore, #tpu.memory_space<semaphore_mem>>
    tpu.wait_dma2 semaphore(%50 : memref<!tpu.dma_semaphore, #tpu.memory_space<semaphore_mem>>) src(%46 : memref<4x256xf32, #tpu.memory_space<any>>) dst(%48 : memref<4x256xf32, #tpu.memory_space<vmem>>)
    %c0_32 = arith.constant 0 : index
    %c0_33 = arith.constant 0 : index
    %c0_34 = arith.constant 0 : index
    %51 = vector.load %arg7[%c0_32, %c0_33, %c0_34] : memref<2x4x256xf32, #tpu.memory_space<vmem>>, vector<2x4x256xf32>
    %c0_35 = arith.constant 0 : index
    %c0_36 = arith.constant 0 : index
    %c0_37 = arith.constant 0 : index
    %52 = vector.load %arg4[%c0_35, %c0_36, %c0_37] : memref<2x4x256xf32, #tpu.memory_space<vmem>>, vector<2x4x256xf32>
    %53 = vector.shape_cast %38 : vector<1x256xi1> to vector<1x1x256xi1>
    %54 = vector.broadcast %53 : vector<1x1x256xi1> to vector<2x4x256xi1>
    %55 = arith.select %54, %51, %52 : vector<2x4x256xi1>, vector<2x4x256xf32>
    %c0_38 = arith.constant 0 : index
    %c0_39 = arith.constant 0 : index
    %c0_40 = arith.constant 0 : index
    %56 = vector.load %arg6[%c0_38, %c0_39, %c0_40] : memref<2x4x256xf32, #tpu.memory_space<vmem>>, vector<2x4x256xf32>
    tpu.vector_store %arg6[%c0_38, %c0_39, %c0_40], %55 {strides = array<i32>} : memref<2x4x256xf32, #tpu.memory_space<vmem>>, vector<2x4x256xf32>,
    return
  }
  func.func @transform_0(%arg0: i32, %arg1: memref<2xi32, #tpu.memory_space<smem>>, %arg2: memref<4xi32, #tpu.memory_space<smem>>) -> (i32, i32) {
    %c0_i32 = arith.constant 0 : i32
    %c0_i32_0 = arith.constant 0 : i32
    %c0_i32_1 = arith.constant 0 : i32
    return %c0_i32, %c0_i32_0 : i32, i32
  }
  func.func @transform_1(%arg0: i32, %arg1: memref<2xi32, #tpu.memory_space<smem>>, %arg2: memref<4xi32, #tpu.memory_space<smem>>) -> (i32, i32, i32) {
    %c0_i32 = arith.constant 0 : i32
    %c0_i32_0 = arith.constant 0 : i32
    %c0_i32_1 = arith.constant 0 : i32
    return %arg0, %c0_i32, %c0_i32_0 : i32, i32, i32
  }
  func.func @transform_3(%arg0: i32, %arg1: memref<2xi32, #tpu.memory_space<smem>>, %arg2: memref<4xi32, #tpu.memory_space<smem>>) -> (i32, i32, i32) {
    %c0_i32 = arith.constant 0 : i32
    %c0_i32_0 = arith.constant 0 : i32
    %c0_i32_1 = arith.constant 0 : i32
    return %arg0, %c0_i32, %c0_i32_0 : i32, i32, i32
  }
}

</mosaic_0001>

<bundles_post_ra>
// kernel: tpu_custom_call.1
= control target key start
LH: loop header
LB: loop body
LE: loop exit
PB: predicated region body
PF: predicated region fallthrough
CT: control target
= control target key end

     0   :  { %s408_s24 = smov [#allocation5]   ;;  %s409_s25 = smov [#allocation6]   ;;  %s562_s0 = inlined_call_operand.hbm [shape: s32[2], index: 0, kind: input, shape index: {}]   ;;  %s563_s2 = inlined_call_operand.hbm [shape: s32[1,256], index: 2, kind: input, shape index: {}]   ;;  %s564_s3 = inlined_call_operand.hbm [shape: f32[2,4,256], index: 3, kind: input, shape index: {}]   ;;  %s565_s4 = inlined_call_operand.hbm [shape: f32[2,4,256], index: 4, kind: input, shape index: {}]   ;;  %s566_s5 = inlined_call_operand.hbm [shape: f32[2,4,256], index: 5, kind: output, shape index: {}]   ;;  %s567_s1 = inlined_call_operand.hbm [shape: s32[4], index: 1, kind: input, shape index: {}]  }
   0x1   :  { %s11_s20 = sshll.u32 %s562_s0, 4  ;;  %s16_s23 = sshll.u32 %s567_s1, 4  ;;  %s12_s20 = int_to_ptr.hbm [resolvable:$true] %s11_s20  ;;  %s17_s23 = int_to_ptr.hbm [resolvable:$true] %s16_s23 }
   0x2   :  { %14 = dma.hbm_to_smem %s12_s20, 16, %s408_s24, [#allocation4] }
   0x3   :  { %19 = dma.hbm_to_smem %s17_s23, 16, %s409_s25, [#allocation4] }
   0x4   :  { %396 = dma.done.wait [#allocation4], 32 }
   0x5   :  { %397 = vsyncadd [#allocation4], 4294967264 }
   0x6   :  { %22 = sfence }
   0x7   :  { %23 = vsyncpa [#allocation8], 0 }
   0x8   :  { %24 = vsyncpa [#allocation11], 0 }
   0x9   :  { %25 = vsyncpa [#allocation9], 0  ;;  %s31_s0 = sshll.u32 %s563_s2, 4  ;;  %s410_s28 = smov [#allocation7]   ;;  %s32_s0 = int_to_ptr.hbm [resolvable:$true] %s31_s0 }
   0xa   :  { %s33_s29 = sshll.u32 %s410_s28, 4  ;;  %s41_s6 = sshll.u32 %s564_s3, 4  ;;  %s34_s29 = int_to_ptr.vmem [resolvable:$true] %s33_s29  ;;  %s42_s6 = int_to_ptr.hbm [resolvable:$true] %s41_s6 }
   0xb   :  { %36 = dma.hbm_to_vmem [thread:$0]  %s32_s0, 32, %s34_s29, [#allocation8]  }
   0xc   :  { %s411_s7 = smov [#allocation10]   ;;  %s412_s9 = smov 128  }
   0xd   :  { %s43_s8 = sshll.u32 %s411_s7, 4  ;;  %s413_s10 = smov 8   ;;  %s44_s8 = int_to_ptr.vmem [resolvable:$true] %s43_s8 }
   0xe   :  { %49 = dma.hbm_to_vmem [thread:$0]  %s42_s6, 256, %s44_s8, [#allocation11], %s412_s9, %s412_s9, %s413_s10  }
   0xf   :  { %398 = dma.done.wait [#allocation8], 32  }
  0x10   :  { %399 = vsyncadd [#allocation8], 4294967264 }
  0x11   :  { %400 = dma.done.wait [#allocation11], 256  }
  0x12   :  { %401 = vsyncadd [#allocation11], 4294967040  ;;  %v100_v0 = vlaneseq  ;;  %s58_s2 = sld [smem:[#allocation6]]  ;;  %v103_v3 = vld [vmem:[#allocation7] sm:$0x3]  ;;  %s414_s15 = smov [#allocation2]  }
  0x13   :  { %s228_s11 = sld [smem:[#allocation6 + $0x1]]  ;;  %s467_s16 = sshll.u32 %s414_s15, 4  ;;  %v416_v6 = vmov 0   ;;  %s77_s16 = int_to_ptr.vmem [resolvable:$true] %s467_s16 }
  0x14   :  { %s229_s12 = sld [smem:[#allocation6 + $0x2]]  ;;  %v101_v1 = vand.u32 127, %v100_v0  ;;  %s415_s18 = smov [#allocation2 + $0x8]  }
  0x15   :  { %s230_s3 = sld [smem:[#allocation6 + $0x3]]  ;;  %s469_s19 = sshll.u32 %s415_s18, 4  ;;  %s97_s19 = int_to_ptr.vmem [resolvable:$true] %s469_s19 }
  0x16   :  { %s463_s13 = sld [smem:[#allocation5]]  ;;  %v102_v2 = vadd.s32 128, %v101_v1  ;;  %s328_s8 = scalar_lea.hbm %s565_s4, 16 }
  0x17   :  { %s465_s14 = sld [smem:[#allocation5 + $0x1]] }
  0x18   :  { %v114_v4 = vstv %s58_s2 }
  0x19   :  { %s236_s17 = sshll.u32 %s228_s11, 4  ;;  %vm115_vm0 = vcmp.ge.s32.totalorder %v103_v3, %v114_v4 }
  0x1a   :  { %v105_v5 = vstv %s236_s17  ;;  %v116_v7 = vsel %vm115_vm0, 1, %v416_v6  ;;  %v123_v8 = vstv %s229_s12 }
  0x1b   :  { %vm106_vm1 = vcmp.ge.s32.totalorder %v101_v1, %v105_v5  ;;  %s237_s20 = sshll.u32 %s230_s3, 4  ;;  %v117_v9 = vperm.slane %v116_v7, 0  ;;  %v118_v10 = vperm.slane %v116_v7, 1  ;;  %vm107_vm2 = vcmp.ge.s32.totalorder %v102_v2, %v105_v5 }
  0x1c   :  { %v109_v11 = vstv %s237_s20  ;;  %vm124_vm3 = vcmp.lt.s32.totalorder %v103_v3, %v123_v8  ;;  %s240_s21 = sshll.u32 %s463_s13, 3 }
  0x1d   :  { %vm110_vm4 = vcmp.lt.s32.totalorder %v101_v1, %v109_v11  ;;  %vm111_vm5 = vcmp.lt.s32.totalorder %v102_v2, %v109_v11  ;;  %vm475_vm6 = vcmp.ne.s32.totalorder %v117_v9, 0  ;;  %s66_s24 = scalar_lea.hbm %s565_s4, %s240_s21  ;;  %s241_s25 = sshll.u32 %s465_s14, 3  ;;  %vm488_vm8 = vcmp.ne.s32.totalorder %v118_v10, 0 }
  0x1e   :  { %vm484_vm7 = vmand %vm106_vm1, %vm110_vm4  ;;  %v125_v15 = vsel %vm124_vm3, 1, %v416_v6  ;;  %s74_s26 = sshll.u32 %s66_s24, 4  ;;  %s84_s28 = scalar_lea.hbm %s565_s4, %s241_s25  ;;  %s75_s26 = int_to_ptr.hbm [resolvable:$true] %s74_s26 }
  0x1f   :  { %vm497_vm9 = vmand %vm107_vm2, %vm111_vm5  ;;  %v126_v17 = vperm.slane %v125_v15, 0  ;;  %v127_v18 = vperm.slane %v125_v15, 1  ;;  %s94_s29 = sshll.u32 %s84_s28, 4  ;;  %s324_s1 = sshra.s32 %s75_s26, 4  ;;  %s325_s1 = int_to_ptr.hbm [resolvable:$true] %s324_s1  ;;  %s95_s29 = int_to_ptr.hbm [resolvable:$true] %s94_s29 }
  0x20   :  { %vm121_vm10 = vmand %vm484_vm7, %vm475_vm6  ;;  %s326_s30 = scalar_lea.hbm %s325_s1, 8  ;;  %p329_p1 = scmp.lt.s32.totalorder %s325_s1, %s565_s4 }
  0x21   :  { %p327_p0 = scmp.ne.s32.totalorder %s325_s1, %s326_s30  ;;  %p330_p2 = scmp.lt.s32.totalorder %s328_s8, %s326_s30 }
  0x23   :  { %p331_p3 = por %p330_p2, %p329_p1 }
  0x25   :  { %p332_p4 = pnand %p331_p3, %p327_p0 }
  0x27   :  { %335 = shalt.err (!%p332_p4)  }
  0x28   :  { %79 = dma.hbm_to_vmem [thread:$0]  %s75_s26, 128, %s77_s16, [#allocation3]  ;;  %vm122_vm11 = vmand %vm497_vm9, %vm488_vm8  ;;  %vm128_vm12 = vcmp.ne.s32.totalorder %v126_v17, 0  ;;  %vm129_vm13 = vcmp.ne.s32.totalorder %v127_v18, 0 }
  0x29   :  { %vm522_vm14 = vmand %vm121_vm10, %vm128_vm12  ;;  %s348_s12 = sshra.s32 %s95_s29, 4  ;;  %s349_s12 = int_to_ptr.hbm [resolvable:$true] %s348_s12 }
  0x2a   :  { %s350_s3 = scalar_lea.hbm %s349_s12, 8  ;;  %p353_p6 = scmp.lt.s32.totalorder %s349_s12, %s565_s4 }
  0x2b   :  { %p351_p5 = scmp.ne.s32.totalorder %s349_s12, %s350_s3  ;;  %p354_p7 = scmp.lt.s32.totalorder %s328_s8, %s350_s3 }
  0x2d   :  { %p355_p8 = por %p354_p7, %p353_p6 }
  0x2f   :  { %p356_p9 = pnand %p355_p8, %p351_p5 }
  0x31   :  { %359 = shalt.err (!%p356_p9)  }
  0x32   :  { %99 = dma.hbm_to_vmem [thread:$0]  %s95_s29, 128, %s97_s19, [#allocation3 + $0x1]  ;;  %vm131_vm15 = vmand %vm122_vm11, %vm129_vm13 }
  0x33   :  { %402 = dma.done.wait [#allocation3], 128 }
  0x34   :  { %403 = vsyncadd [#allocation3], 4294967168 }
  0x35   :  { %404 = dma.done.wait [#allocation3 + $0x1], 128 }
  0x36   :  { %405 = vsyncadd [#allocation3 + $0x1], 4294967168  ;;  %v138_v20 = vld [vmem:[#allocation2] sm:$0xff]  ;;  %v139_v21 = vld [vmem:[#allocation2 + $0x8] sm:$0xff]  ;;  %v142_v24 = vsel %vm522_vm14, 1, %v416_v6  ;;  %v143_v25 = vsel %vm131_vm15, 1, %v416_v6 }
  0x37   :  { %150 = vst [vmem:[#allocation1] ss:$2 sm:$0xff] %v138_v20  ;;  %v140_v22 = vld [vmem:[#allocation10] sm:$0xff]  ;;  %v141_v23 = vld [vmem:[#allocation10 + $0x8] sm:$0xff]  ;;  %v145_v30 = vperm.slane %v143_v25, 0  ;;  %v144_v31 = vperm.slane %v142_v24, 0 }
  0x38   :  { %154 = vst [vmem:[#allocation1 + $0x10] ss:$2 sm:$0xff] %v139_v21  ;;  %vm184_vm2 = vcmask 1043456   ;;  %s417_s4 = smov [#allocation12]   ;;  %s197_s18 = sshll.u32 %s566_s5, 4  ;;  %s198_s18 = int_to_ptr.hbm [resolvable:$true] %s197_s18 }
  0x39   :  { %vm540_vm0 = vcmp.eq.s32.totalorder %v145_v30, 1  ;;  %vm544_vm1 = vcmp.eq.s32.totalorder %v144_v31, 1  ;;  %s195_s15 = sshll.u32 %s417_s4, 4  ;;  %s196_s15 = int_to_ptr.vmem [resolvable:$true] %s195_s15 }
  0x3e   :  { %v151_v26 = vld.sshfl [vmem:[#allocation1] sm:$0xff pattern:$0x75316420]  ;;  %v152_v27 = vld.sshfl [vmem:[#allocation1 + $0x8] sm:$0xff pattern:$0x75316420] }
  0x3f   :  { %163 = vst [vmem:[#allocation1] ss:$2 sm:$0xff] %v140_v22  ;;  %v155_v28 = vld.sshfl [vmem:[#allocation1 + $0x10] sm:$0xff pattern:$0x75316420] }
  0x40   :  { %v156_v29 = vld.sshfl [vmem:[#allocation1 + $0x18] sm:$0xff pattern:$0x75316420] }
  0x41   :  { %167 = vst [vmem:[#allocation1 + $0x10] ss:$2 sm:$0xff] %v141_v23 }
  0x46   :  { %v164_v34 = vld.sshfl [vmem:[#allocation1] sm:$0xff pattern:$0x75316420]  ;;  %v165_v35 = vld.sshfl [vmem:[#allocation1 + $0x8] sm:$0xff pattern:$0x75316420] }
  0x47   :  { %v175_v36 = vsel %vm540_vm0, %v152_v27, %v165_v35  ;;  %v174_v38 = vsel %vm544_vm1, %v151_v26, %v164_v34 }
  0x48   :  { %v182_v37 = vrot.slane %v175_v36, 4  ;;  %v168_v39 = vld.sshfl [vmem:[#allocation1 + $0x10] sm:$0xff pattern:$0x75316420] }
  0x49   :  { %v169_v40 = vld.sshfl [vmem:[#allocation1 + $0x18] sm:$0xff pattern:$0x75316420]  ;;  %v176_v44 = vsel %vm544_vm1, %v155_v28, %v168_v39 }
  0x4a   :  { %v185_v41 = vsel %vm184_vm2, %v174_v38, %v182_v37  ;;  %v177_v42 = vsel %vm540_vm0, %v156_v29, %v169_v40 }
  0x4b   :  { %189 = vst [vmem:[#allocation12] sm:$0xff] %v185_v41  ;;  %v183_v43 = vrot.slane %v177_v42, 4 }
  0x4d   :  { %v186_v45 = vsel %vm184_vm2, %v176_v44, %v183_v43 }
  0x4e   :  { %190 = vst [vmem:[#allocation12 + $0x8] sm:$0xff] %v186_v45 }
  0x4f   :  { %203 = dma.vmem_to_hbm [thread:$0]  %s196_s15, 256, %s198_s18, [#allocation9], %s412_s9, %s412_s9, %s413_s10  }
  0x50   :  { %406 = dma.done.wait [#allocation9], 256  }
  0x51   :  { %407 = vsyncadd [#allocation9], 4294967040 }
  0x52   :  { %208 = vsyncpa [#allocation8], 1 }
  0x53   :  { %209 = vsyncpa [#allocation11], 1 }
  0x54   :  { %210 = vsyncpa [#allocation9], 1 }
  0x55   :  { %211 = vsyncmov [#allocation3] }
  0x58   :  { %s212_s5 = vpop.sfrf %211 }
  0x59   :  { %p238_p10 = scmp.ne.s32.totalorder %s212_s5, 0 }
  0x5b   :  { %216 = shalt.err (%p238_p10)  }
  0x5c   :  { %218 = vsyncmov [#allocation3 + $0x1] }
  0x5f   :  { %s219_s19 = vpop.sfrf %218 }
  0x60   :  { %p239_p11 = scmp.ne.s32.totalorder %s219_s19, 0 }
  0x62   :  { %223 = shalt.err (%p239_p11)  }

</bundles_post_ra>
